<compile_context>
chip_gen: v6e
topology: v6e:2x2x1
jax: 0.10.0
libtpu: 0.0.40
codegen_flags: <defaults>
</compile_context>

<pallas_src>
import jax
import jax.numpy as jnp
from jax.experimental import pallas as pl
from jax.experimental.pallas import tpu as pltpu

K_PAD = 128      # lane-aligned contraction size (D_IN=100 zero-padded to 128)
D_HID = 64
MAX_TILE_B = 512  # fits comfortably in VMEM with double buffering on v5e-v7x


def _round_up(n, m):
    return ((n + m - 1) // m) * m


def nlpnet_kernel(x_ref, w1_ref, b1_ref, w2_ref, b2_ref, o_ref):
    # x_ref:  [TILE_B, 128]   (K zero-padded)
    # w1_ref: [128, 64]       (rows 100..127 are zero)
    # b1_ref: [1, 64]
    # w2_ref: [1, 64]         (second-layer weight as a row vector)
    # b2_ref: [1, 1] in SMEM  (scalar)
    # o_ref:  [TILE_B, 1]
    x = x_ref[...]
    h = jnp.dot(x, w1_ref[...], preferred_element_type=jnp.float32)  # MXU, [TILE_B, 64]
    h = jnp.maximum(h + b1_ref[...], 0.0)                            # bias + ReLU (VPU)
    # Second layer (out_features=1): VPU multiply + XLU lane reduce instead of
    # an N=1 MXU matmul.
    y = jnp.sum(h * w2_ref[...], axis=-1, keepdims=True) + b2_ref[0, 0]
    # NOTE: last dim 1 -> masked store; output bytes are ~1% of input bytes,
    # so we keep the natural [B, 1] layout for the consumer.
    o_ref[...] = y.astype(o_ref.dtype)


def nlpnet_forward(x, w1, b1, w2, b2, *, tile_b=MAX_TILE_B):
    """x: [B, 100], w1: [100, 64], b1: [64], w2: [64, 1], b2: [1]."""
    B, d_in = x.shape
    d_hid = w1.shape[1]
    assert w1.shape[0] == d_in and d_hid == D_HID

    # Pick an effective batch tile: at most `tile_b`, at least round_up(B, 8).
    tile_b_eff = min(tile_b, _round_up(B, 8))
    B_pad = _round_up(B, tile_b_eff)

    # One-time layout prep outside the kernel (cheap, traced by XLA):
    #   - zero-pad K: 100 -> 128 (mathematically identical),
    #   - zero-pad B to the tile,
    #   - reshape small params to kernel-friendly 2D shapes.
    x_p = jnp.pad(x.astype(jnp.float32), ((0, B_pad - B), (0, K_PAD - d_in)))
    w1_p = jnp.pad(w1.astype(jnp.float32), ((0, K_PAD - d_in), (0, 0)))
    b1_r = b1.reshape(1, d_hid).astype(jnp.float32)
    w2_r = w2.reshape(1, d_hid).astype(jnp.float32)   # [64,1] -> row [1,64]
    b2_r = b2.reshape(1, 1).astype(jnp.float32)

    grid = (B_pad // tile_b_eff,)

    out = pl.pallas_call(
        nlpnet_kernel,
        out_shape=jax.ShapeDtypeStruct((B_pad, 1), jnp.float32),
        grid_spec=pltpu.PrefetchScalarGridSpec(
            num_scalar_prefetch=0,
            grid=grid,
            in_specs=[
                # Streamed batch tiles of x (double-buffered by Pallas).
                pl.BlockSpec((tile_b_eff, K_PAD), lambda i: (i, 0)),
                # Weights / biases: resident across all grid steps.
                pl.BlockSpec((K_PAD, D_HID), lambda i: (0, 0)),
                pl.BlockSpec((1, D_HID), lambda i: (0, 0)),
                pl.BlockSpec((1, D_HID), lambda i: (0, 0)),
                # Scalar bias in SMEM.
                pl.BlockSpec(memory_space=pltpu.SMEM),
            ],
            out_specs=pl.BlockSpec((tile_b_eff, 1), lambda i: (i, 0)),
        ),
        compiler_params=pltpu.CompilerParams(
            dimension_semantics=("parallel",),
        ),
    )(x_p, w1_p, b1_r, w2_r, b2_r)

    return out[:B]


def reference_forward(x, w1, b1, w2, b2):
    h = jnp.maximum(x @ w1 + b1.reshape(1, -1), 0.0)
    return h @ w2 + b2.reshape(1, -1)


if __name__ == "__main__":
    key = jax.random.PRNGKey(0)
    k_x, k_w1, k_b1, k_w2, k_b2 = jax.random.split(key, 5)

    B, D_IN, D_HIDDEN, D_OUT = 8, 100, 64, 1

    # Deterministic PyTorch-like uniform(-1/sqrt(fan_in), 1/sqrt(fan_in)) init.
    bound1 = 1.0 / jnp.sqrt(jnp.float32(D_IN))
    bound2 = 1.0 / jnp.sqrt(jnp.float32(D_HIDDEN))
    w1 = jax.random.uniform(k_w1, (D_IN, D_HIDDEN), jnp.float32, -bound1, bound1)
    b1 = jax.random.uniform(k_b1, (D_HIDDEN,), jnp.float32, -bound1, bound1)
    w2 = jax.random.uniform(k_w2, (D_HIDDEN, D_OUT), jnp.float32, -bound2, bound2)
    b2 = jax.random.uniform(k_b2, (D_OUT,), jnp.float32, -bound2, bound2)

    x = jax.random.normal(k_x, (B, D_IN), jnp.float32)

    out = nlpnet_forward(x, w1, b1, w2, b2)
    out = jax.block_until_ready(out)

    ref = reference_forward(x, w1, b1, w2, b2)
    assert out.shape == (B, D_OUT)
    assert jnp.allclose(out, ref, atol=1e-5, rtol=1e-5)

    print("KERNEL_OK")
</pallas_src>

<mosaic_0001>
module attributes {stable_mosaic.version = 11 : i64} {
  func.func @nlpnet_kernel(%arg0: i32, %arg1: memref<8x128xf32, #tpu.memory_space<vmem>>, %arg2: memref<128x64xf32, #tpu.memory_space<vmem>>, %arg3: memref<1x64xf32, #tpu.memory_space<vmem>>, %arg4: memref<1x64xf32, #tpu.memory_space<vmem>>, %arg5: memref<1x1xf32, #tpu.memory_space<smem>>, %arg6: memref<8x1xf32, #tpu.memory_space<vmem>>) attributes {dimension_semantics = [#tpu.dimension_semantics<parallel>], iteration_bounds = array<i64: 1>, scalar_prefetch = 0 : i64, scratch_operands = 0 : i64, tpu.core_type = #tpu.core_type<tc>, window_params = [{transform_indices = @transform_0, window_bounds = array<i64: 8, 128>}, {pipeline_mode = #tpu.pipeline_mode<synchronous>, transform_indices = @transform_1, window_bounds = array<i64: 128, 64>}, {pipeline_mode = #tpu.pipeline_mode<synchronous>, transform_indices = @transform_2, window_bounds = array<i64: 1, 64>}, {pipeline_mode = #tpu.pipeline_mode<synchronous>, transform_indices = @transform_3, window_bounds = array<i64: 1, 64>}, {transform_indices = @transform_4, window_bounds = array<i64: 1, 1>}, {transform_indices = @transform_5, window_bounds = array<i64: 8, 1>}]} {
    %c0 = arith.constant 0 : index
    %c0_0 = arith.constant 0 : index
    %0 = vector.load %arg1[%c0, %c0_0] : memref<8x128xf32, #tpu.memory_space<vmem>>, vector<8x128xf32>
    %c0_1 = arith.constant 0 : index
    %c0_2 = arith.constant 0 : index
    %1 = vector.load %arg2[%c0_1, %c0_2] : memref<128x64xf32, #tpu.memory_space<vmem>>, vector<128x64xf32>
    %cst = arith.constant dense<0.000000e+00> : vector<8x64xf32>
    %2 = tpu.matmul %0, %1, %cst {dimension_numbers = #tpu.dot_dimension_numbers<[1], [0], [0], [1], [0, 0, 1, 1], [], []>} : vector<8x128xf32>, vector<128x64xf32>, vector<8x64xf32> -> vector<8x64xf32>
    %c0_3 = arith.constant 0 : index
    %c0_4 = arith.constant 0 : index
    %3 = vector.load %arg3[%c0_3, %c0_4] : memref<1x64xf32, #tpu.memory_space<vmem>>, vector<1x64xf32>
    %4 = vector.broadcast %3 : vector<1x64xf32> to vector<8x64xf32>
    %5 = arith.addf %2, %4 : vector<8x64xf32>
    %cst_5 = arith.constant 0.000000e+00 : f32
    %6 = vector.broadcast %cst_5 : f32 to vector<8x64xf32>
    %7 = arith.maximumf %5, %6 : vector<8x64xf32>
    %c0_6 = arith.constant 0 : index
    %c0_7 = arith.constant 0 : index
    %8 = vector.load %arg4[%c0_6, %c0_7] : memref<1x64xf32, #tpu.memory_space<vmem>>, vector<1x64xf32>
    %9 = vector.broadcast %8 : vector<1x64xf32> to vector<8x64xf32>
    %10 = arith.mulf %7, %9 : vector<8x64xf32>
    %cst_8 = arith.constant dense<0.000000e+00> : vector<8xf32>
    %11 = vector.multi_reduction <add>, %10, %cst_8 [1] : vector<8x64xf32> to vector<8xf32>
    %12 = vector.shape_cast %11 : vector<8xf32> to vector<8x1xf32>
    %c0_9 = arith.constant 0 : index
    %c0_10 = arith.constant 0 : index
    %13 = memref.load %arg5[%c0_9, %c0_10] : memref<1x1xf32, #tpu.memory_space<smem>>
    %14 = vector.broadcast %13 : f32 to vector<8x1xf32>
    %15 = arith.addf %12, %14 : vector<8x1xf32>
    %c0_11 = arith.constant 0 : index
    %c0_12 = arith.constant 0 : index
    %16 = vector.load %arg6[%c0_11, %c0_12] : memref<8x1xf32, #tpu.memory_space<vmem>>, vector<8x1xf32>
    tpu.vector_store %arg6[%c0_11, %c0_12], %15 {strides = array<i32>} : memref<8x1xf32, #tpu.memory_space<vmem>>, vector<8x1xf32>,
    return
  }
  func.func @transform_0(%arg0: i32) -> (i32, i32) {
    %c0_i32 = arith.constant 0 : i32
    %c0_i32_0 = arith.constant 0 : i32
    return %arg0, %c0_i32 : i32, i32
  }
  func.func @transform_1(%arg0: i32) -> (i32, i32) {
    %c0_i32 = arith.constant 0 : i32
    %c0_i32_0 = arith.constant 0 : i32
    %c0_i32_1 = arith.constant 0 : i32
    return %c0_i32, %c0_i32_0 : i32, i32
  }
  func.func @transform_2(%arg0: i32) -> (i32, i32) {
    %c0_i32 = arith.constant 0 : i32
    %c0_i32_0 = arith.constant 0 : i32
    %c0_i32_1 = arith.constant 0 : i32
    return %c0_i32, %c0_i32_0 : i32, i32
  }
  func.func @transform_3(%arg0: i32) -> (i32, i32) {
    %c0_i32 = arith.constant 0 : i32
    %c0_i32_0 = arith.constant 0 : i32
    %c0_i32_1 = arith.constant 0 : i32
    return %c0_i32, %c0_i32_0 : i32, i32
  }
  func.func @transform_4(%arg0: i32) -> (i32, i32) {
    %c0_i32 = arith.constant 0 : i32
    %c0_i32_0 = arith.constant 0 : i32
    %c0_i32_1 = arith.constant 0 : i32
    return %c0_i32, %c0_i32_0 : i32, i32
  }
  func.func @transform_5(%arg0: i32) -> (i32, i32) {
    %c0_i32 = arith.constant 0 : i32
    %c0_i32_0 = arith.constant 0 : i32
    return %arg0, %c0_i32 : i32, i32
  }
}

</mosaic_0001>

<bundles_post_ra>
// kernel: tpu_custom_call.1
= control target key start
LH: loop header
LB: loop body
LE: loop exit
PB: predicated region body
PF: predicated region fallthrough
CT: control target
= control target key end

     0   :  { %v193_v0 = vmov 0.0   ;;  %vm194_vm0 = vmmov 0   ;;  %vm124_vm1 = vcmask 523264   ;;  %vm131_vm2 = vcmask 7168   ;;  %s288_s1 = inlined_call_operand.vmem [shape: f32[128,64], index: 1, kind: input, shape index: {}]   ;;  %s289_s0 = inlined_call_operand.vmem [shape: f32[8,128], index: 0, kind: input, shape index: {}]   ;;  %s290_s2 = inlined_call_operand.vmem [shape: f32[1,64], index: 2, kind: input, shape index: {}]   ;;  %s291_s3 = inlined_call_operand.vmem [shape: f32[1,64], index: 3, kind: input, shape index: {}]   ;;  %s292_s4 = inlined_call_operand.<no memory space> [shape: f32[1,1], index: 4, kind: input, shape index: {}]   ;;  %s293_s5 = inlined_call_operand.vmem [shape: f32[8,1], index: 5, kind: output, shape index: {}]  }
   0x1   :  { %156 = vmatprep.subr.mxu0 %v193_v0  ;;  %v37_v1 = vld [vmem:[%s288_s1 + $0x78] sm:$0xff]  ;;  %v36_v2 = vld [vmem:[%s288_s1 + $0x70] sm:$0xff]  ;;  %188 = vmatprep.mubr.msk.f32.mxu0 %vm194_vm0, %v193_v0  ;;  %v35_v3 = vld [vmem:[%s288_s1 + $0x68] sm:$0xff]  ;;  %v129_v26 = vstv %s292_s4 }
   0x2   :  { %157 = vmatpush3.msra.mxu0 %v37_v1  ;;  %v34_v4 = vld [vmem:[%s288_s1 + $0x60] sm:$0xff]  ;;  %v33_v5 = vld [vmem:[%s288_s1 + $0x58] sm:$0xff]  ;;  %v32_v6 = vld [vmem:[%s288_s1 + $0x50] sm:$0xff] }
   0x3   :  { %158 = vmatprep.subr.mxu0 %v193_v0  ;;  %v31_v7 = vld [vmem:[%s288_s1 + $0x48] sm:$0xff]  ;;  %v30_v8 = vld [vmem:[%s288_s1 + $0x40] sm:$0xff]  ;;  %v29_v9 = vld [vmem:[%s288_s1 + $0x38] sm:$0xff] }
   0x4   :  { %159 = vmatpush3.msra.mxu0 %v36_v2  ;;  %v28_v10 = vld [vmem:[%s288_s1 + $0x30] sm:$0xff]  ;;  %v27_v11 = vld [vmem:[%s288_s1 + $0x28] sm:$0xff]  ;;  %v26_v12 = vld [vmem:[%s288_s1 + $0x20] sm:$0xff] }
   0x5   :  { %160 = vmatprep.subr.mxu0 %v193_v0  ;;  %v25_v13 = vld [vmem:[%s288_s1 + $0x18] sm:$0xff]  ;;  %v24_v14 = vld [vmem:[%s288_s1 + $0x10] sm:$0xff]  ;;  %v23_v15 = vld [vmem:[%s288_s1 + $0x8] sm:$0xff] }
   0x6   :  { %161 = vmatpush3.msra.mxu0 %v35_v3  ;;  %v22_v16 = vld [vmem:[%s288_s1] sm:$0xff] }
   0x7   :  { %162 = vmatprep.subr.mxu0 %v193_v0  ;;  %v21_v17 = vld [vmem:[%s289_s0] sm:$0xff] }
   0x8   :  { %163 = vmatpush3.msra.mxu0 %v34_v4  ;;  %v137_v18 = vld [vmem:[%s290_s2] ss:$0 sm:$0xff] }
   0x9   :  { %164 = vmatprep.subr.mxu0 %v193_v0  ;;  %v138_v22 = vld [vmem:[%s291_s3] ss:$0 sm:$0xff] }
   0xa   :  { %165 = vmatpush3.msra.mxu0 %v33_v5 }
   0xb   :  { %166 = vmatprep.subr.mxu0 %v193_v0 }
   0xc   :  { %167 = vmatpush3.msra.mxu0 %v32_v6 }
   0xd   :  { %168 = vmatprep.subr.mxu0 %v193_v0 }
   0xe   :  { %169 = vmatpush3.msra.mxu0 %v31_v7 }
   0xf   :  { %170 = vmatprep.subr.mxu0 %v193_v0 }
  0x10   :  { %171 = vmatpush3.msra.mxu0 %v30_v8 }
  0x11   :  { %172 = vmatprep.subr.mxu0 %v193_v0 }
  0x12   :  { %173 = vmatpush3.msra.mxu0 %v29_v9 }
  0x13   :  { %174 = vmatprep.subr.mxu0 %v193_v0 }
  0x14   :  { %175 = vmatpush3.msra.mxu0 %v28_v10 }
  0x15   :  { %176 = vmatprep.subr.mxu0 %v193_v0 }
  0x16   :  { %177 = vmatpush3.msra.mxu0 %v27_v11 }
  0x17   :  { %178 = vmatprep.subr.mxu0 %v193_v0 }
  0x18   :  { %179 = vmatpush3.msra.mxu0 %v26_v12 }
  0x19   :  { %180 = vmatprep.subr.mxu0 %v193_v0 }
  0x1a   :  { %181 = vmatpush3.msra.mxu0 %v25_v13 }
  0x1b   :  { %182 = vmatprep.subr.mxu0 %v193_v0 }
  0x1c   :  { %183 = vmatpush3.msra.mxu0 %v24_v14 }
  0x1d   :  { %184 = vmatprep.subr.mxu0 %v193_v0 }
  0x1e   :  { %185 = vmatpush3.msra.mxu0 %v23_v15 }
  0x1f   :  { %186 = vmatprep.subr.mxu0 %v193_v0 }
  0x20   :  { %187 = vmatpush3.msra.mxu0 %v22_v16 }
  0x21   :  { %189 = vmatmul.mubr.f32.vlgmr.msra.gmra.mxu0 %v21_v17 }
  0xe1   :  { %v111_v19 = vpop.f32.mrf.mxu0 }
  0xe2   :  { %v112_v20 = vadd.f32 %v137_v18, %v111_v19 }
  0xe3   :  { %v190_v21 = vpop.f32.mrf.mxu0 }
  0xe4   :  { %v115_v23 = vmax.f32 %v112_v20, 0.0 }
  0xe6   :  { %v123_v24 = vmul.f32 %v138_v22, %v115_v23 }
  0xe8   :  { %v125_v25 = vsel %vm124_vm1, %v123_v24, 0.0 }
  0xe9   :  { %126 = vadd.xlane.f32.xlu0 %v125_v25 }
 0x172   :  { %v127_v27 = vpop.xlane.xlu0 %126 }
 0x173   :  { %v130_v28 = vadd.f32 %v129_v26, %v127_v27 }
 0x175   :  { %132 = vst.msk [vmem:[%s293_s5] sm:$0xff] %vm131_vm2, %v130_v28 }

</bundles_post_ra>
